<compile_context>
chip_gen: v7x
topology: tpu7x:2x2x1
jax: 0.10.0
libtpu: 0.0.40
codegen_flags: <defaults>
</compile_context>

<pallas_src>
import jax
import jax.numpy as jnp
from jax.experimental import pallas as pl
from jax.experimental.pallas import tpu as pltpu

_LANES = 128


def _simplenet_kernel(p_ref, x_ref, mu_ref, var_ref):
    # packed scalar params in SMEM: [w1, b1, w_mu, b_mu, w_var, b_var]
    w1, b1 = p_ref[0], p_ref[1]
    w_mu, b_mu = p_ref[2], p_ref[3]
    w_var, b_var = p_ref[4], p_ref[5]

    x = x_ref[...]                                   # (TR, 128) f32 tile
    hidden = jnp.maximum(x * w1 + b1, 0.0)           # relu(x @ W1 + b1), 1x1 => VPU

    mu_ref[...] = (hidden * w_mu + b_mu).astype(mu_ref.dtype)

    z = hidden * w_var + b_var
    # numerically-stable softplus == jax.nn.softplus; exp/log1p use the EUP slot.
    # TODO(synk): if v7x bundle dumps show EUP as the binding slot, a cheaper
    # softplus approximation could be swapped in where tolerances allow.
    sp = jnp.maximum(z, 0.0) + jnp.log1p(jnp.exp(-jnp.abs(z)))
    var_ref[...] = (sp + 1e-6).astype(var_ref.dtype)


def pack_simplenet_params(w1, b1, w_mu, b_mu, w_var, b_var):
    """Pack the six scalar parameters into one (6,) f32 array.

    Hoist this out of the hot path: call once per parameter update, reuse the
    packed array for every forward call.
    """
    return jnp.concatenate(
        [jnp.ravel(w1), jnp.ravel(b1), jnp.ravel(w_mu), jnp.ravel(b_mu),
         jnp.ravel(w_var), jnp.ravel(b_var)]).astype(jnp.float32)


def _tile_rows(rows, max_rows):
    """Block rows: multiple of 8 (or == rows), >= 2 grid steps when possible."""
    if rows <= 8:
        return rows                       # single block equal to the full dim
    half = -(-rows // 2)                  # ceil(rows / 2)
    half = -(-half // 8) * 8              # sublane-align up
    return min(max_rows, half)


def simplenet_forward(x, packed_params, *, block_rows=4096,
                      out_dtype=jnp.float32):
    """x: [N, 1] f32 (any shape works; treated elementwise since all ops are 1x1).

    packed_params: (6,) f32 array from pack_simplenet_params().
    Returns (mu, var) with x's shape, dtype out_dtype (f32 default for parity).
    """
    orig_shape = x.shape
    xf = jnp.ravel(x).astype(jnp.float32)
    n = xf.size                                      # static Python int
    rows = -(-n // _LANES)                           # ceil(n / 128)
    lane_pad = rows * _LANES - n

    if lane_pad:
        # Ragged n: pad only the <128-element lane tail. Aligned n is zero-copy.
        xf = jnp.pad(xf, (0, lane_pad))
    x2d = xf.reshape(rows, _LANES)

    tr = _tile_rows(rows, block_rows)
    grid = (-(-rows // tr),)                         # partial edge block is fine

    tile_bytes = tr * _LANES * 4
    # 3 streamed arrays x 2 buffers x tile + headroom; safe on v5e/v6e/v7x.
    vmem_limit = int(min(48 * 2**20, max(32 * 2**20, 8 * tile_bytes)))

    tile_spec = pl.BlockSpec((tr, _LANES), lambda i: (i, 0))
    smem_spec = pl.BlockSpec(memory_space=pltpu.MemorySpace.SMEM)

    mu2d, var2d = pl.pallas_call(
        _simplenet_kernel,
        out_shape=(
            jax.ShapeDtypeStruct((rows, _LANES), out_dtype),
            jax.ShapeDtypeStruct((rows, _LANES), out_dtype),
        ),
        grid=grid,
        in_specs=[smem_spec, tile_spec],
        out_specs=(tile_spec, tile_spec),
        compiler_params=pltpu.CompilerParams(
            dimension_semantics=("parallel",),
            vmem_limit_bytes=vmem_limit),
    )(packed_params, x2d)

    if lane_pad:
        mu = mu2d.reshape(-1)[:n].reshape(orig_shape)
        var = var2d.reshape(-1)[:n].reshape(orig_shape)
    else:
        mu = mu2d.reshape(orig_shape)
        var = var2d.reshape(orig_shape)
    return mu, var


def simplenet_reference(x, w1, b1, w_mu, b_mu, w_var, b_var):
    hidden = jax.nn.relu(x * w1[0] + b1[0])
    mu = hidden * w_mu[0] + b_mu[0]
    var = jax.nn.softplus(hidden * w_var[0] + b_var[0]) + 1e-6
    return mu, var


if __name__ == "__main__":
    key = jax.random.PRNGKey(0)
    kx, kx2, kx3, kmu_w, kmu_b, kvar_w, kvar_b = jax.random.split(key, 7)

    # deterministic synthetic parameters (module __init__ shapes)
    w1_init, w2_init = 1.5, -0.25
    w1 = jnp.array([w1_init], dtype=jnp.float32)      # fc1_weight [1,1] -> scalar
    b1 = jnp.array([w2_init], dtype=jnp.float32)      # fc1_bias [1]
    w_mu = jax.random.normal(kmu_w, (1,), jnp.float32)    # out_mu.weight [1,1]
    b_mu = jax.random.normal(kmu_b, (1,), jnp.float32)    # out_mu.bias [1]
    w_var = jax.random.normal(kvar_w, (1,), jnp.float32)  # out_var.weight [1,1]
    b_var = jax.random.normal(kvar_b, (1,), jnp.float32)  # out_var.bias [1]

    # pack params ONCE (hoisted out of the per-call wrapper)
    params = pack_simplenet_params(w1, b1, w_mu, b_mu, w_var, b_var)

    # small batch of scalar-feature inputs: [N, 1]
    x = jax.random.normal(kx, (8, 1), jnp.float32)
    mu, var = simplenet_forward(x, params)
    jax.block_until_ready((mu, var))
    mu_ref, var_ref = simplenet_reference(x, w1, b1, w_mu, b_mu, w_var, b_var)
    assert mu.shape == x.shape and var.shape == x.shape, "shape mismatch"
    assert jnp.allclose(mu, mu_ref, atol=1e-5), "mu mismatch"
    assert jnp.allclose(var, var_ref, atol=1e-5), "var mismatch"
    assert bool(jnp.all(var > 0)), "var must be positive"

    # ragged large batch (n % 128 != 0): lane-tail pad + partial edge block
    x_big = jax.random.normal(kx2, (200_000, 1), jnp.float32)
    mu_b, var_b = simplenet_forward(x_big, params)
    jax.block_until_ready((mu_b, var_b))
    mu_b_ref, var_b_ref = simplenet_reference(
        x_big, w1, b1, w_mu, b_mu, w_var, b_var)
    assert mu_b.shape == x_big.shape and var_b.shape == x_big.shape
    assert jnp.allclose(mu_b, mu_b_ref, atol=1e-5), "mu (ragged) mismatch"
    assert jnp.allclose(var_b, var_b_ref, atol=1e-5), "var (ragged) mismatch"
    assert bool(jnp.all(var_b > 0)), "var (ragged) must be positive"

    # lane-aligned large batch (n % 128 == 0): zero-copy path, multi-step grid
    x_al = jax.random.normal(kx3, (1 << 19, 1), jnp.float32)
    mu_a, var_a = simplenet_forward(x_al, params)
    jax.block_until_ready((mu_a, var_a))
    mu_a_ref, var_a_ref = simplenet_reference(
        x_al, w1, b1, w_mu, b_mu, w_var, b_var)
    assert mu_a.shape == x_al.shape and var_a.shape == x_al.shape
    assert jnp.allclose(mu_a, mu_a_ref, atol=1e-5), "mu (aligned) mismatch"
    assert jnp.allclose(var_a, var_a_ref, atol=1e-5), "var (aligned) mismatch"
    assert bool(jnp.all(var_a > 0)), "var (aligned) must be positive"

    print("KERNEL_OK")
</pallas_src>

<mosaic_0001>
module attributes {stable_mosaic.version = 11 : i64} {
  func.func @_simplenet_kernel(%arg0: i32, %arg1: memref<6xf32, #tpu.memory_space<smem>>, %arg2: memref<1x128xf32, #tpu.memory_space<vmem>>, %arg3: memref<1x128xf32, #tpu.memory_space<vmem>>, %arg4: memref<1x128xf32, #tpu.memory_space<vmem>>) attributes {dimension_semantics = [#tpu.dimension_semantics<parallel>], iteration_bounds = array<i64: 1>, scalar_prefetch = 0 : i64, scratch_operands = 0 : i64, tpu.core_type = #tpu.core_type<tc>, window_params = [{transform_indices = @transform_0, window_bounds = array<i64: 6>}, {transform_indices = @transform_1, window_bounds = array<i64: 1, 128>}, {transform_indices = @transform_2, window_bounds = array<i64: 1, 128>}, {transform_indices = @transform_3, window_bounds = array<i64: 1, 128>}]} {
    %c0 = arith.constant 0 : index
    %0 = memref.load %arg1[%c0] : memref<6xf32, #tpu.memory_space<smem>>
    %c1 = arith.constant 1 : index
    %1 = memref.load %arg1[%c1] : memref<6xf32, #tpu.memory_space<smem>>
    %c2 = arith.constant 2 : index
    %2 = memref.load %arg1[%c2] : memref<6xf32, #tpu.memory_space<smem>>
    %c3 = arith.constant 3 : index
    %3 = memref.load %arg1[%c3] : memref<6xf32, #tpu.memory_space<smem>>
    %c4 = arith.constant 4 : index
    %4 = memref.load %arg1[%c4] : memref<6xf32, #tpu.memory_space<smem>>
    %c5 = arith.constant 5 : index
    %5 = memref.load %arg1[%c5] : memref<6xf32, #tpu.memory_space<smem>>
    %c0_0 = arith.constant 0 : index
    %c0_1 = arith.constant 0 : index
    %6 = vector.load %arg2[%c0_0, %c0_1] : memref<1x128xf32, #tpu.memory_space<vmem>>, vector<1x128xf32>
    %7 = vector.broadcast %0 : f32 to vector<1x128xf32>
    %8 = arith.mulf %6, %7 : vector<1x128xf32>
    %9 = vector.broadcast %1 : f32 to vector<1x128xf32>
    %10 = arith.addf %8, %9 : vector<1x128xf32>
    %cst = arith.constant 0.000000e+00 : f32
    %11 = vector.broadcast %cst : f32 to vector<1x128xf32>
    %12 = arith.maximumf %10, %11 : vector<1x128xf32>
    %13 = vector.broadcast %2 : f32 to vector<1x128xf32>
    %14 = arith.mulf %12, %13 : vector<1x128xf32>
    %15 = vector.broadcast %3 : f32 to vector<1x128xf32>
    %16 = arith.addf %14, %15 : vector<1x128xf32>
    %c0_2 = arith.constant 0 : index
    %c0_3 = arith.constant 0 : index
    %17 = vector.load %arg3[%c0_2, %c0_3] : memref<1x128xf32, #tpu.memory_space<vmem>>, vector<1x128xf32>
    tpu.vector_store %arg3[%c0_2, %c0_3], %16 {strides = array<i32>} : memref<1x128xf32, #tpu.memory_space<vmem>>, vector<1x128xf32>,
    %18 = vector.broadcast %4 : f32 to vector<1x128xf32>
    %19 = arith.mulf %12, %18 : vector<1x128xf32>
    %20 = vector.broadcast %5 : f32 to vector<1x128xf32>
    %21 = arith.addf %19, %20 : vector<1x128xf32>
    %cst_4 = arith.constant 0.000000e+00 : f32
    %22 = vector.broadcast %cst_4 : f32 to vector<1x128xf32>
    %23 = arith.maximumf %21, %22 : vector<1x128xf32>
    %24 = math.absf %21 : vector<1x128xf32>
    %cst_5 = arith.constant 0.000000e+00 : f32
    %25 = vector.broadcast %cst_5 : f32 to vector<1x128xf32>
    %26 = arith.subf %25, %24 : vector<1x128xf32>
    %27 = math.exp %26 : vector<1x128xf32>
    %28 = math.log1p %27 : vector<1x128xf32>
    %29 = arith.addf %23, %28 : vector<1x128xf32>
    %cst_6 = arith.constant 9.99999997E-7 : f32
    %30 = vector.broadcast %cst_6 : f32 to vector<1x128xf32>
    %31 = arith.addf %29, %30 : vector<1x128xf32>
    %c0_7 = arith.constant 0 : index
    %c0_8 = arith.constant 0 : index
    %32 = vector.load %arg4[%c0_7, %c0_8] : memref<1x128xf32, #tpu.memory_space<vmem>>, vector<1x128xf32>
    tpu.vector_store %arg4[%c0_7, %c0_8], %31 {strides = array<i32>} : memref<1x128xf32, #tpu.memory_space<vmem>>, vector<1x128xf32>,
    return
  }
  func.func @transform_0(%arg0: i32) -> i32 {
    %c0_i32 = arith.constant 0 : i32
    %c0_i32_0 = arith.constant 0 : i32
    return %c0_i32 : i32
  }
  func.func @transform_1(%arg0: i32) -> (i32, i32) {
    %c0_i32 = arith.constant 0 : i32
    %c0_i32_0 = arith.constant 0 : i32
    return %arg0, %c0_i32 : i32, i32
  }
  func.func @transform_2(%arg0: i32) -> (i32, i32) {
    %c0_i32 = arith.constant 0 : i32
    %c0_i32_0 = arith.constant 0 : i32
    return %arg0, %c0_i32 : i32, i32
  }
  func.func @transform_3(%arg0: i32) -> (i32, i32) {
    %c0_i32 = arith.constant 0 : i32
    %c0_i32_0 = arith.constant 0 : i32
    return %arg0, %c0_i32 : i32, i32
  }
}

</mosaic_0001>

<bundles_post_ra>
// kernel: tpu_custom_call.1
= control target key start
LH: loop header
LB: loop body
LE: loop exit
PB: predicated region body
PF: predicated region fallthrough
CT: control target
= control target key end

     0   :  { %9 = vsyncpa [#allocation4], 0  ;;  %s227_s0 = inlined_call_operand.hbm [shape: f32[6], index: 0, kind: input, shape index: {}]   ;;  %s228_s1 = inlined_call_operand.vmem [shape: f32[1,128], index: 1, kind: input, shape index: {}]   ;;  %s229_s2 = inlined_call_operand.hbm [shape: f32[1,128], index: 2, kind: output, shape index: {0}]   ;;  %s230_s3 = inlined_call_operand.hbm [shape: f32[1,128], index: 3, kind: output, shape index: {1}]  }
   0x1   :  { %10 = vsyncpa [#allocation3], 0 }
   0x2   :  { %11 = vsyncpa [#allocation7], 0  ;;  %s105_s14 = scalar_lea.hbm %s227_s0, 16 }
   0x3   :  { %p106_p0 = scmp.ne.s32.totalorder %s227_s0, %s105_s14  ;;  %p109_p1 = scmp.lt.u32.totalorder %s105_s14, %s227_s0 }
   0x5   :  { %p111_p2 = pnand %p109_p1, %p106_p0 }
   0x7   :  { %114 = shalt.err (!%p111_p2)
}
   0x8   :  { %s165_s19 = smov [#allocation2]  }
   0x9   :  { %19 = dma.hbm_to_smem %s227_s0, 16, %s165_s19, [#allocation4]  }
   0xa   :  { %159 = dma.done.wait [#allocation4], 16  }
   0xb   :  { %160 = vsyncadd [#allocation4], 4294967280 }
   0xc   :  { %25 = sfence }
   0xd   :  { %s26_s22 = sld [smem:[#allocation2]]  ;;  %s93_s23 = sld [smem:[#allocation2 + $0x1]]  ;;  %v32_v0 = vld [vmem:[%s228_s1] sm:$0x1] }
   0xe   :  { %s94_s24 = sld [smem:[#allocation2 + $0x2]]  ;;  %s96_s25 = sld [smem:[#allocation2 + $0x4]] }
   0xf   :  { %s95_s26 = sld [smem:[#allocation2 + $0x3]]  ;;  %s97_s29 = sld [smem:[#allocation2 + $0x5]] }
  0x10   :  { %s166_s0 = smov [#allocation5]  }
  0x11   :  { %s70_s30 = sshll.u32 %s166_s0, 4  ;;  %s71_s30 = int_to_ptr.vmem [resolvable:$true] %s70_s30 }
  0x12   :  { %s115_s1 = scalar_lea.vmem %s71_s30, 16  ;;  %s119_s4 = scalar_lea.vmem %s71_s30, 32 }
  0x13   :  { %v33_v1 = vstv %s26_s22  ;;  %v35_v2 = vstv %s93_s23  ;;  %p116_p3 = scmp.ne.s32.totalorder %s71_s30, %s115_s1  ;;  %p120_p4 = scmp.lt.s32.totalorder %s71_s30, %s71_s30 }
  0x14   :  { %v34_v3 = vmul.f32 %v33_v1, %v32_v0  ;;  %v38_v5 = vstv %s94_s24  ;;  %v43_v6 = vstv %s96_s25  ;;  %p121_p5 = scmp.lt.s32.totalorder %s119_s4, %s115_s1 }
  0x15   :  { %v40_v8 = vstv %s95_s26  ;;  %v45_v9 = vstv %s97_s29 }
  0x16   :  { %v36_v4 = vadd.f32 %v35_v2, %v34_v3  ;;  %p122_p6 = por %p121_p5, %p120_p4 }
  0x18   :  { %v37_v7 = vmax.f32 %v36_v4, 0.0  ;;  %p123_p7 = pnand %p122_p6, %p116_p3 }
  0x1a   :  { %v39_v10 = vmul.f32 %v38_v5, %v37_v7  ;;  %v44_v11 = vmul.f32 %v43_v6, %v37_v7 }
  0x1c   :  { %v41_v12 = vadd.f32 %v40_v8, %v39_v10  ;;  %v46_v13 = vadd.f32 %v45_v9, %v44_v11 }
  0x1e   :  { %42 = vst [vmem:[#allocation5] sm:$0x1] %v41_v12  ;;  %v48_v14 = vand.u32 2147483647, %v46_v13 }
  0x1f   :  { %126 = shalt.err (!%p123_p7)
}
  0x20   :  { %s127_s7 = scalar_lea.hbm %s229_s2, 16 }
  0x21   :  { %p128_p8 = scmp.ne.s32.totalorder %s229_s2, %s127_s7  ;;  %p131_p9 = scmp.lt.u32.totalorder %s127_s7, %s229_s2 }
  0x23   :  { %p133_p10 = pnand %p131_p9, %p128_p8 }
  0x25   :  { %136 = shalt.err (!%p133_p10)
}
  0x26   :  { %73 = dma.vmem_to_hbm [thread:$0]  %s71_s30, 16, %s229_s2, [#allocation3]   ;;  %v49_v15 = vsub.f32 0.0, %v48_v14  ;;  %v47_v24 = vmax.f32 %v46_v13, 0.0 }
  0x27   :  { %s167_s14 = smov [#allocation6]  }
  0x28   :  { %v50_v16 = vmul.f32 1.442695, %v49_v15  ;;  %s80_s15 = sshll.u32 %s167_s14, 4  ;;  %s81_s15 = int_to_ptr.vmem [resolvable:$true] %s80_s15 }
  0x29   :  { %s137_s2 = scalar_lea.vmem %s81_s15, 16  ;;  %s141_s16 = scalar_lea.vmem %s81_s15, 32 }
  0x2a   :  { %101 = vpow2.f32 %v50_v16  ;;  %p138_p11 = scmp.ne.s32.totalorder %s81_s15, %s137_s2  ;;  %p142_p12 = scmp.lt.s32.totalorder %s81_s15, %s81_s15 }
  0x2b   :  { %p143_p13 = scmp.lt.s32.totalorder %s141_s16, %s137_s2 }
  0x2d   :  { %p144_p0 = por %p143_p13, %p142_p12 }
  0x2f   :  { %p145_p1 = pnand %p144_p0, %p138_p11 }
  0x34   :  { %v102_v17 = vpop.eup %101 }
  0x35   :  { %v52_v18 = vadd.f32 1.0, %v102_v17  ;;  %v55_v19 = vmul.f32 -0.5, %v102_v17  ;;  %v58_v21 = vand.u32 2147483647, %v102_v17 }
  0x37   :  { %103 = vlog2.f32 %v52_v18  ;;  %v56_v20 = vadd.f32 1.0, %v55_v19  ;;  %vm59_vm0 = vcmp.lt.f32.partialorder %v58_v21, 0.0004427343 }
  0x39   :  { %v57_v22 = vmul.f32 %v102_v17, %v56_v20 }
  0x41   :  { %v104_v23 = vpop.eup %103 }
  0x42   :  { %v54_v25 = vmul.f32 0.6931472, %v104_v23 }
  0x44   :  { %v60_v26 = vsel %vm59_vm0, %v57_v22, %v54_v25 }
  0x45   :  { %v61_v27 = vadd.f32 %v60_v26, %v47_v24 }
  0x47   :  { %v62_v28 = vadd.f32 1e-06, %v61_v27 }
  0x49   :  { %63 = vst [vmem:[#allocation6] sm:$0x1] %v62_v28 }
  0x4a   :  { %148 = shalt.err (!%p145_p1)
}
  0x4b   :  { %s149_s19 = scalar_lea.hbm %s230_s3, 16 }
  0x4c   :  { %p150_p2 = scmp.ne.s32.totalorder %s230_s3, %s149_s19  ;;  %p153_p3 = scmp.lt.u32.totalorder %s149_s19, %s230_s3 }
  0x4e   :  { %p155_p4 = pnand %p153_p3, %p150_p2 }
  0x50   :  { %158 = shalt.err (!%p155_p4)
}
  0x51   :  { %83 = dma.vmem_to_hbm [thread:$0]  %s81_s15, 16, %s230_s3, [#allocation7]  }
  0x52   :  { %161 = dma.done.wait [#allocation3], 16  }
  0x53   :  { %162 = vsyncadd [#allocation3], 4294967280 }
  0x54   :  { %163 = dma.done.wait [#allocation7], 16  }
  0x55   :  { %164 = vsyncadd [#allocation7], 4294967280 }
  0x56   :  { %90 = vsyncpa [#allocation3], 1 }
  0x57   :  { %91 = vsyncpa [#allocation7], 1 }
  0x58   :  { %92 = vsyncpa [#allocation4], 1 }

</bundles_post_ra>
